<compile_context>
chip_gen: v7x
topology: tpu7x:2x2x1
jax: 0.10.0
libtpu: 0.0.40
codegen_flags: <defaults>
</compile_context>

<pallas_src>
import jax
import jax.numpy as jnp
from jax.experimental import pallas as pl
from jax.experimental.pallas import tpu as pltpu

_VPRELU_SCALE = 1.7139588594436646

_TARGET_BLOCK_BYTES = 8 << 20     # ~8 MiB per block
_MIN_GRID_STEPS = 4               # keep pipeline + both v7x TCs busy
_VMEM_HEADROOM_BYTES = 4 << 20
_VMEM_LIMIT_CAP = 48 << 20        # stay well under v7x's 64 MiB VMEM per TC


def _vprelu_kernel(x_ref, o_ref):
    x = x_ref[...]
    # Scalar 0 (no zeros_like broadcast); scale cast to the input dtype
    # (matches PyTorch's in-dtype scalar multiply).
    o_ref[...] = jnp.maximum(x, 0) * jnp.asarray(_VPRELU_SCALE, dtype=x.dtype)


def _vprelu_ref(x):
    return jnp.maximum(x, 0) * jnp.asarray(_VPRELU_SCALE, dtype=x.dtype)


def _pick_cols(total: int) -> int:
    """Widest lane-dense width (multiple of 128) that exactly divides `total`.

    `total` is always a multiple of 128 here, so 128 is a guaranteed fallback.
    """
    for c in (4096, 2048, 1024, 512, 256, 128):
        if total % c == 0:
            return c
    return 128


def _run_2d(x2d: jax.Array, tile_r: int, cols: int, dtype) -> jax.Array:
    rows = x2d.shape[0]
    grid = (pl.cdiv(rows, tile_r),)
    block_bytes = tile_r * cols * jnp.dtype(dtype).itemsize
    # 2x(in) + 2x(out) double buffering + headroom; must be explicit because it
    # exceeds the default scoped VMEM (16 MiB v5e, 32 MiB v6e/v7x).
    vmem_limit = int(min(max(4 * block_bytes + _VMEM_HEADROOM_BYTES, 16 << 20),
                         _VMEM_LIMIT_CAP))
    return pl.pallas_call(
        _vprelu_kernel,
        out_shape=jax.ShapeDtypeStruct((rows, cols), dtype),
        grid_spec=pltpu.PrefetchScalarGridSpec(
            num_scalar_prefetch=0,
            grid=grid,
            in_specs=[pl.BlockSpec((tile_r, cols), lambda i: (i, 0))],
            out_specs=pl.BlockSpec((tile_r, cols), lambda i: (i, 0)),
        ),
        compiler_params=pltpu.CompilerParams(
            dimension_semantics=("parallel",),
            vmem_limit_bytes=vmem_limit,
        ),
    )(x2d)


def vprelu(x: jax.Array) -> jax.Array:
    """Applies VPReLU elementwise. Works for any shape / float dtype."""
    orig_shape = x.shape
    dtype = x.dtype
    itemsize = jnp.dtype(dtype).itemsize
    # Sublane packing granularity: 8 for 32-bit, 16 for 16-bit, 32 for 8-bit.
    sub = max(8, 32 // max(itemsize, 1))

    flat = x.reshape(-1)
    total = flat.shape[0]
    if total == 0:
        return x

    main = (total // 128) * 128
    if main == 0:
        # Tiny (<128 elements): not worth a kernel launch.
        return _vprelu_ref(flat).reshape(orig_shape)

    # Ragged sizes: kernel handles the 128-divisible prefix; the <128-element
    # tail is computed with plain jnp (no full-array pad + slice round trip).
    main_flat = flat if main == total else flat[:main]

    cols = _pick_cols(main)
    rows = main // cols
    x2d = main_flat.reshape(rows, cols)

    if rows <= sub:
        # Full-extent row block (no (8,128) divisibility constraint applies).
        tile_r = rows
    else:
        # Row tile targeting ~8 MiB blocks, multiple of the sublane pack.
        tile_r = _TARGET_BLOCK_BYTES // (cols * itemsize)
        tile_r = max(sub, (tile_r // sub) * sub)
        # Guarantee >= _MIN_GRID_STEPS grid steps for big-enough tensors so the
        # "parallel" axis can shard across v7x's two TensorCores and the
        # double buffers actually pipeline (avoid a degenerate grid=(1,)).
        if rows > _MIN_GRID_STEPS * sub:
            cap = max(sub, (pl.cdiv(rows, _MIN_GRID_STEPS) // sub) * sub)
            tile_r = min(tile_r, cap)
        if tile_r > rows:
            tile_r = rows

    out_main = _run_2d(x2d, tile_r, cols, dtype).reshape(-1)

    if main == total:
        return out_main.reshape(orig_shape)

    tail_out = _vprelu_ref(flat[main:])
    return jnp.concatenate([out_main, tail_out]).reshape(orig_shape)


# TODO(synk): `inplace=True` has no functional-XLA equivalent; callers can get
# the same effect via jit buffer donation + input_output_aliases if needed.


if __name__ == "__main__":
    key = jax.random.PRNGKey(0)
    x = jax.random.normal(key, (2, 4, 16, 16), dtype=jnp.float32)

    out = jax.block_until_ready(vprelu(x))

    # Reference check against plain JAX.
    ref = jnp.maximum(x, 0.0) * _VPRELU_SCALE
    assert out.shape == x.shape
    assert out.dtype == x.dtype
    assert jnp.allclose(out, ref, atol=1e-6, rtol=1e-6)

    # Ragged-size path (prefix kernel + jnp tail) sanity check.
    xr = jax.random.normal(jax.random.PRNGKey(1), (5, 129), dtype=jnp.float32)
    outr = jax.block_until_ready(vprelu(xr))
    refr = jnp.maximum(xr, 0.0) * _VPRELU_SCALE
    assert jnp.allclose(outr, refr, atol=1e-6, rtol=1e-6)

    print("KERNEL_OK")
</pallas_src>

<mosaic_0001>
module attributes {stable_mosaic.version = 11 : i64} {
  func.func @_vprelu_kernel(%arg0: i32, %arg1: memref<1x2048xf32, #tpu.memory_space<vmem>>, %arg2: memref<1x2048xf32, #tpu.memory_space<vmem>>) attributes {dimension_semantics = [#tpu.dimension_semantics<parallel>], iteration_bounds = array<i64: 1>, scalar_prefetch = 0 : i64, scratch_operands = 0 : i64, tpu.core_type = #tpu.core_type<tc>, window_params = [{transform_indices = @transform_0, window_bounds = array<i64: 1, 2048>}, {transform_indices = @transform_1, window_bounds = array<i64: 1, 2048>}]} {
    %c0 = arith.constant 0 : index
    %c0_0 = arith.constant 0 : index
    %0 = vector.load %arg1[%c0, %c0_0] : memref<1x2048xf32, #tpu.memory_space<vmem>>, vector<1x2048xf32>
    %cst = arith.constant 0.000000e+00 : f32
    %1 = vector.broadcast %cst : f32 to vector<1x2048xf32>
    %2 = arith.maximumf %0, %1 : vector<1x2048xf32>
    %cst_1 = arith.constant 1.71395886 : f32
    %3 = vector.broadcast %cst_1 : f32 to vector<1x2048xf32>
    %4 = arith.mulf %2, %3 : vector<1x2048xf32>
    %c0_2 = arith.constant 0 : index
    %c0_3 = arith.constant 0 : index
    %5 = vector.load %arg2[%c0_2, %c0_3] : memref<1x2048xf32, #tpu.memory_space<vmem>>, vector<1x2048xf32>
    tpu.vector_store %arg2[%c0_2, %c0_3], %4 {strides = array<i32>} : memref<1x2048xf32, #tpu.memory_space<vmem>>, vector<1x2048xf32>,
    return
  }
  func.func @transform_0(%arg0: i32) -> (i32, i32) {
    %c0_i32 = arith.constant 0 : i32
    %c0_i32_0 = arith.constant 0 : i32
    return %arg0, %c0_i32 : i32, i32
  }
  func.func @transform_1(%arg0: i32) -> (i32, i32) {
    %c0_i32 = arith.constant 0 : i32
    %c0_i32_0 = arith.constant 0 : i32
    return %arg0, %c0_i32 : i32, i32
  }
}

</mosaic_0001>

<bundles_post_ra>
// kernel: tpu_custom_call.1
= control target key start
LH: loop header
LB: loop body
LE: loop exit
PB: predicated region body
PF: predicated region fallthrough
CT: control target
= control target key end

     0   :  { %6 = vsyncpa [#allocation3], 0  ;;  %s130_s0 = inlined_call_operand.hbm [shape: f32[1,2048], index: 0, kind: input, shape index: {}]   ;;  %s131_s1 = inlined_call_operand.hbm [shape: f32[1,2048], index: 1, kind: output, shape index: {}]  }
   0x1   :  { %7 = vsyncpa [#allocation4], 0  ;;  %s94_s6 = smov [#allocation2]   ;;  %s46_s10 = scalar_lea.hbm %s130_s0, 256 }
   0x2   :  { %s14_s7 = sshll.u32 %s94_s6, 4  ;;  %p47_p0 = scmp.ne.s32.totalorder %s130_s0, %s46_s10  ;;  %s15_s7 = int_to_ptr.vmem [resolvable:$true] %s14_s7 }
   0x3   :  { %p50_p1 = scmp.lt.u32.totalorder %s46_s10, %s130_s0 }
   0x5   :  { %p52_p2 = pnand %p50_p1, %p47_p0 }
   0x7   :  { %55 = shalt.err (!%p52_p2)
}
   0x8   :  { %s56_s15 = scalar_lea.vmem %s15_s7, 256  ;;  %p61_p4 = scmp.lt.s32.totalorder %s15_s7, %s15_s7 }
   0x9   :  { %p57_p3 = scmp.ne.s32.totalorder %s15_s7, %s56_s15  ;;  %p62_p5 = scmp.lt.s32.totalorder %s56_s15, %s56_s15 }
   0xb   :  { %p63_p6 = por %p62_p5, %p61_p4 }
   0xd   :  { %p64_p7 = pnand %p63_p6, %p57_p3 }
   0xf   :  { %67 = shalt.err (!%p64_p7)
}
  0x10   :  { %17 = dma.hbm_to_vmem [thread:$0]  %s130_s0, 256, %s15_s7, [#allocation3]  }
  0x11   :  { %90 = dma.done.wait [#allocation3], 256  }
  0x12   :  { %91 = vsyncadd [#allocation3], 4294967040  ;;  %v21_v0 = vld [vmem:[#allocation2] sm:$0xff]  ;;  %v22_v1 = vld [vmem:[#allocation2 + $0x8] sm:$0xff]  ;;  %s95_s18 = smov [#allocation5]  }
  0x13   :  { %s35_s19 = sshll.u32 %s95_s18, 4  ;;  %v23_v2 = vmax.f32 %v21_v0, 0.0  ;;  %v24_v3 = vmax.f32 %v22_v1, 0.0  ;;  %s36_s19 = int_to_ptr.vmem [resolvable:$true] %s35_s19 }
  0x14   :  { %s68_s20 = scalar_lea.vmem %s36_s19, 256  ;;  %p73_p9 = scmp.lt.s32.totalorder %s36_s19, %s36_s19 }
  0x15   :  { %v25_v4 = vmul.f32 1.7139589, %v23_v2  ;;  %v26_v5 = vmul.f32 1.7139589, %v24_v3  ;;  %p69_p8 = scmp.ne.s32.totalorder %s36_s19, %s68_s20  ;;  %p74_p10 = scmp.lt.s32.totalorder %s68_s20, %s68_s20 }
  0x17   :  { %27 = vst [vmem:[#allocation5] sm:$0xff] %v25_v4  ;;  %28 = vst [vmem:[#allocation5 + $0x8] sm:$0xff] %v26_v5  ;;  %p75_p11 = por %p74_p10, %p73_p9 }
  0x19   :  { %p76_p12 = pnand %p75_p11, %p69_p8 }
  0x1b   :  { %79 = shalt.err (!%p76_p12)
}
  0x1c   :  { %s80_s22 = scalar_lea.hbm %s131_s1, 256 }
  0x1d   :  { %p81_p13 = scmp.ne.s32.totalorder %s131_s1, %s80_s22  ;;  %p84_p0 = scmp.lt.u32.totalorder %s80_s22, %s131_s1 }
  0x1f   :  { %p86_p1 = pnand %p84_p0, %p81_p13 }
  0x21   :  { %89 = shalt.err (!%p86_p1)
}
  0x22   :  { %38 = dma.vmem_to_hbm [thread:$0]  %s36_s19, 256, %s131_s1, [#allocation4]  }
  0x23   :  { %92 = dma.done.wait [#allocation4], 256  }
  0x24   :  { %93 = vsyncadd [#allocation4], 4294967040 }
  0x25   :  { %42 = vsyncpa [#allocation3], 1 }
  0x26   :  { %43 = vsyncpa [#allocation4], 1 }

</bundles_post_ra>
